<compile_context>
chip_gen: v7x
topology: tpu7x:2x2x1
jax: 0.10.0
libtpu: 0.0.40
codegen_flags: <defaults>
</compile_context>

<pallas_src>
import functools

import jax
import jax.numpy as jnp
from jax import lax
from jax.experimental import pallas as pl
from jax.experimental.pallas import tpu as pltpu

EPS = 1e-5


def bottleneck_kernel(x_ref, w1_ref, w2_ref, w3_ref, bn12_ref, bn3_ref,
                      out_ref, *, L):
    x = x_ref[...]                                     # (Cin, N*L) f32

    def bn(h, gamma, beta):
        # Training-mode BN, single-pass stats over the flattened N*L axis
        # (== per-channel stats over (N, L)).  Fused per-channel affine:
        # h * a + b  with  a = gamma*rsqrt(var+eps),  b = beta - mean*a.
        mean = jnp.mean(h, axis=-1, keepdims=True)          # (C, 1)
        msq = jnp.mean(h * h, axis=-1, keepdims=True)       # (C, 1)
        var = msq - mean * mean                             # biased variance
        a = gamma * lax.rsqrt(var + EPS)                    # rsqrt -> EUP slot
        return h * a + (beta - mean * a)

    # --- conv1: 1x1 conv == channel matmul on the MXU ---
    h = jnp.dot(w1_ref[...], x, preferred_element_type=jnp.float32)    # (W, NL)
    h = jnp.maximum(bn(h, bn12_ref[:, 0:1], bn12_ref[:, 1:2]), 0.0)

    # --- conv2: kernel_size=3, padding=1, fused into ONE matmul (K = 3W) ---
    # Shifted copies along the flattened N*L lane axis (cyclic wrap); the mask
    # zeroes every per-sample boundary column, which covers both the conv zero
    # padding and the batch seams introduced by flattening.
    # (pltpu.roll would move the shift onto the XLU slot; slice+concat is the
    #  robust lowering for this non-128-aligned lane width.)
    pos = lax.broadcasted_iota(jnp.int32, h.shape, 1) % L
    h_m1 = jnp.where(pos == 0, 0.0,
                     jnp.concatenate([h[:, -1:], h[:, :-1]], axis=1))   # h[l-1]
    h_p1 = jnp.where(pos == L - 1, 0.0,
                     jnp.concatenate([h[:, 1:], h[:, :1]], axis=1))     # h[l+1]
    h_cat = jnp.concatenate([h_m1, h, h_p1], axis=0)                    # (3W, NL)
    h2 = jnp.dot(w2_ref[...], h_cat, preferred_element_type=jnp.float32)
    h2 = jnp.maximum(bn(h2, bn12_ref[:, 2:3], bn12_ref[:, 3:4]), 0.0)

    # --- conv3: 1x1 conv back up to planes * expansion ---
    h3 = jnp.dot(w3_ref[...], h2, preferred_element_type=jnp.float32)  # (Cout, NL)
    h3 = bn(h3, bn3_ref[:, 0:1], bn3_ref[:, 1:2])

    # --- residual add (downsample is None -> identity) + final ReLU ---
    out_ref[...] = jnp.maximum(h3 + x, 0.0)


def bottleneck_pallas(x, w1, g1, b1, w2, g2, b2, w3, g3, b3):
    N, cin, L = x.shape
    width = w1.shape[0]
    cout = w3.shape[0]
    # downsample=None => identity residual requires matching channel counts.
    assert cout == cin, "downsample=None requires planes*expansion == inplanes"
    NL = N * L

    # Layout: (N, C, L) -> (C, N*L) so every conv is a 2-D MXU matmul with a
    # lane-dense N*L axis; undo on the way out.
    x2d = jnp.transpose(x, (1, 0, 2)).reshape(cin, NL)
    # Pre-fuse the three conv2 taps into a single (W, 3W) contraction matrix;
    # tap k multiplies h[l - 1 + k].
    w2f = jnp.concatenate([w2[0], w2[1], w2[2]], axis=1)       # (W, 3W)
    # Pack per-channel BN params: columns = [g1, b1, g2, b2] and [g3, b3].
    bn12 = jnp.concatenate([g1, b1, g2, b2], axis=1)           # (W, 4)
    bn3 = jnp.concatenate([g3, b3], axis=1)                    # (Cout, 2)

    # Problem is tiny (a few KiB): keep everything resident in VMEM, no grid.
    # At production sizes: tile the N*L axis with a BlockSpec grid (mark it
    # "parallel" for megacore on v7x), re-derive tile size against v7x's
    # 64 MiB VMEM, and cast matmul operands to bf16 (keep f32 accumulation).
    args = (x2d, w1, w2f, w3, bn12, bn3)
    out2d = pl.pallas_call(
        functools.partial(bottleneck_kernel, L=L),
        out_shape=jax.ShapeDtypeStruct((cout, NL), x.dtype),
        in_specs=[pl.BlockSpec(memory_space=pltpu.MemorySpace.VMEM)
                  for _ in args],
        out_specs=pl.BlockSpec(memory_space=pltpu.MemorySpace.VMEM),
    )(*args)
    return jnp.transpose(out2d.reshape(cout, N, L), (1, 0, 2))


def bottleneck_ref(x, w1, g1, b1, w2, g2, b2, w3, g3, b3):
    """Pure-JAX reference using lax.conv_general_dilated (for validation)."""
    dn = ('NCH', 'OIH', 'NCH')

    def conv1x1(h, w):                     # w: (O, C)
        return lax.conv_general_dilated(h, w[:, :, None], (1,), 'VALID',
                                        dimension_numbers=dn)

    def conv3(h, w):                       # w: (3, O, C) -> (O, C, 3)
        return lax.conv_general_dilated(h, jnp.transpose(w, (1, 2, 0)), (1,),
                                        ((1, 1),), dimension_numbers=dn)

    def bn(h, g, b):                       # two-pass, training-mode, biased var
        mean = jnp.mean(h, axis=(0, 2), keepdims=True)
        var = jnp.mean((h - mean) ** 2, axis=(0, 2), keepdims=True)
        return (h - mean) / jnp.sqrt(var + EPS) * g[None] + b[None]

    h = jax.nn.relu(bn(conv1x1(x, w1), g1, b1))
    h = jax.nn.relu(bn(conv3(h, w2), g2, b2))
    h = bn(conv1x1(h, w3), g3, b3)
    return jax.nn.relu(h + x)


if __name__ == "__main__":
    # Bottleneck(inplanes=16, planes=4): width = 4, out channels = planes*4 = 16
    # = inplanes, so downsample=None and the identity add is valid.
    # stride=1, dilation=1, groups=1.
    N, L = 2, 16
    planes = 4
    inplanes = planes * 4          # 16
    width = planes                 # base_width=64, groups=1 -> width = planes
    cout = planes * 4              # 16

    key = jax.random.PRNGKey(0)
    ks = jax.random.split(key, 10)
    x = jax.random.normal(ks[0], (N, inplanes, L), dtype=jnp.float32)

    w1 = 0.2 * jax.random.normal(ks[1], (width, inplanes), dtype=jnp.float32)
    g1 = 1.0 + 0.1 * jax.random.normal(ks[2], (width, 1), dtype=jnp.float32)
    b1 = 0.1 * jax.random.normal(ks[3], (width, 1), dtype=jnp.float32)

    w2 = 0.2 * jax.random.normal(ks[4], (3, width, width), dtype=jnp.float32)
    g2 = 1.0 + 0.1 * jax.random.normal(ks[5], (width, 1), dtype=jnp.float32)
    b2 = 0.1 * jax.random.normal(ks[6], (width, 1), dtype=jnp.float32)

    w3 = 0.2 * jax.random.normal(ks[7], (cout, width), dtype=jnp.float32)
    g3 = 1.0 + 0.1 * jax.random.normal(ks[8], (cout, 1), dtype=jnp.float32)
    b3 = 0.1 * jax.random.normal(ks[9], (cout, 1), dtype=jnp.float32)

    params = (w1, g1, b1, w2, g2, b2, w3, g3, b3)

    out = bottleneck_pallas(x, *params)
    out = jax.block_until_ready(out)

    ref = bottleneck_ref(x, *params)
    ref = jax.block_until_ready(ref)

    assert out.shape == x.shape and out.dtype == x.dtype
    # Slightly relaxed tolerance: kernel uses single-pass variance
    # (E[x^2] - mean^2) vs the two-pass reference.
    if not jnp.allclose(out, ref, atol=2e-4, rtol=2e-4):
        raise AssertionError("Pallas Bottleneck output mismatch vs JAX reference")

    print("KERNEL_OK")
</pallas_src>

<mosaic_0001>
module attributes {stable_mosaic.version = 11 : i64} {
  func.func @bottleneck_kernel(%arg0: memref<16x32xf32, #tpu.memory_space<vmem>>, %arg1: memref<4x16xf32, #tpu.memory_space<vmem>>, %arg2: memref<4x12xf32, #tpu.memory_space<vmem>>, %arg3: memref<16x4xf32, #tpu.memory_space<vmem>>, %arg4: memref<4x4xf32, #tpu.memory_space<vmem>>, %arg5: memref<16x2xf32, #tpu.memory_space<vmem>>, %arg6: memref<16x32xf32, #tpu.memory_space<vmem>>) attributes {dimension_semantics = [], scalar_prefetch = 0 : i64, scratch_operands = 0 : i64, tpu.core_type = #tpu.core_type<tc>} {
    %c0 = arith.constant 0 : index
    %c0_0 = arith.constant 0 : index
    %0 = vector.load %arg0[%c0, %c0_0] : memref<16x32xf32, #tpu.memory_space<vmem>>, vector<16x32xf32>
    %c0_1 = arith.constant 0 : index
    %c0_2 = arith.constant 0 : index
    %1 = vector.load %arg1[%c0_1, %c0_2] : memref<4x16xf32, #tpu.memory_space<vmem>>, vector<4x16xf32>
    %cst = arith.constant dense<0.000000e+00> : vector<4x32xf32>
    %2 = tpu.matmul %1, %0, %cst {dimension_numbers = #tpu.dot_dimension_numbers<[1], [0], [0], [1], [0, 0, 1, 1], [], []>} : vector<4x16xf32>, vector<16x32xf32>, vector<4x32xf32> -> vector<4x32xf32>
    %c0_3 = arith.constant 0 : index
    %c0_4 = arith.constant 0 : index
    %3 = vector.load %arg4[%c0_3, %c0_4] : memref<4x4xf32, #tpu.memory_space<vmem>>, vector<4x1xf32>
    %c0_5 = arith.constant 0 : index
    %c1 = arith.constant 1 : index
    %4 = vector.load %arg4[%c0_5, %c1] : memref<4x4xf32, #tpu.memory_space<vmem>>, vector<4x1xf32>
    %cst_6 = arith.constant dense<0.000000e+00> : vector<4xf32>
    %5 = vector.multi_reduction <add>, %2, %cst_6 [1] : vector<4x32xf32> to vector<4xf32>
    %6 = vector.shape_cast %5 : vector<4xf32> to vector<4x1xf32>
    %cst_7 = arith.constant 3.200000e+01 : f32
    %7 = vector.broadcast %cst_7 : f32 to vector<4x1xf32>
    %8 = arith.divf %6, %7 : vector<4x1xf32>
    %9 = arith.mulf %2, %2 : vector<4x32xf32>
    %cst_8 = arith.constant dense<0.000000e+00> : vector<4xf32>
    %10 = vector.multi_reduction <add>, %9, %cst_8 [1] : vector<4x32xf32> to vector<4xf32>
    %11 = vector.shape_cast %10 : vector<4xf32> to vector<4x1xf32>
    %cst_9 = arith.constant 3.200000e+01 : f32
    %12 = vector.broadcast %cst_9 : f32 to vector<4x1xf32>
    %13 = arith.divf %11, %12 : vector<4x1xf32>
    %14 = arith.mulf %8, %8 : vector<4x1xf32>
    %15 = arith.subf %13, %14 : vector<4x1xf32>
    %cst_10 = arith.constant 9.99999974E-6 : f32
    %16 = vector.broadcast %cst_10 : f32 to vector<4x1xf32>
    %17 = arith.addf %15, %16 : vector<4x1xf32>
    %18 = math.rsqrt %17 : vector<4x1xf32>
    %19 = arith.mulf %3, %18 : vector<4x1xf32>
    %20 = vector.broadcast %19 : vector<4x1xf32> to vector<4x32xf32>
    %21 = arith.mulf %2, %20 : vector<4x32xf32>
    %22 = arith.mulf %8, %19 : vector<4x1xf32>
    %23 = arith.subf %4, %22 : vector<4x1xf32>
    %24 = vector.broadcast %23 : vector<4x1xf32> to vector<4x32xf32>
    %25 = arith.addf %21, %24 : vector<4x32xf32>
    %cst_11 = arith.constant 0.000000e+00 : f32
    %26 = vector.broadcast %cst_11 : f32 to vector<4x32xf32>
    %27 = arith.maximumf %25, %26 : vector<4x32xf32>
    %28 = tpu.iota {dimensions = array<i32: 1>} : vector<4x32xi32>
    %c16_i32 = arith.constant 16 : i32
    %c0_i32 = arith.constant 0 : i32
    %29 = arith.cmpi eq, %c16_i32, %c0_i32 : i32
    %c1_i32 = arith.constant 1 : i32
    %30 = arith.select %29, %c1_i32, %c16_i32 : i32
    %31 = vector.broadcast %30 : i32 to vector<4x32xi32>
    %32 = arith.remsi %28, %31 : vector<4x32xi32>
    %c0_i32_12 = arith.constant 0 : i32
    %33 = vector.broadcast %c0_i32_12 : i32 to vector<4x32xi32>
    %34 = arith.cmpi ne, %32, %33 : vector<4x32xi32>
    %c0_i32_13 = arith.constant 0 : i32
    %35 = vector.broadcast %c0_i32_13 : i32 to vector<4x32xi32>
    %36 = arith.cmpi slt, %32, %35 : vector<4x32xi32>
    %c0_i32_14 = arith.constant 0 : i32
    %37 = arith.cmpi slt, %30, %c0_i32_14 : i32
    %38 = vector.broadcast %37 : i1 to vector<4x32xi1>
    %39 = vector.broadcast %38 : vector<4x32xi1> to vector<4x32xi1>
    %40 = arith.xori %36, %39 : vector<4x32xi1>
    %41 = arith.andi %40, %34 : vector<4x32xi1>
    %42 = vector.broadcast %30 : i32 to vector<4x32xi32>
    %43 = arith.addi %32, %42 : vector<4x32xi32>
    %44 = arith.select %41, %43, %32 : vector<4x32xi1>, vector<4x32xi32>
    %c0_i32_15 = arith.constant 0 : i32
    %45 = vector.broadcast %c0_i32_15 : i32 to vector<4x32xi32>
    %46 = arith.cmpi eq, %44, %45 : vector<4x32xi32>
    %47 = vector.extract_strided_slice %27 {offsets = [0, 31], sizes = [4, 1], strides = [1, 1]} : vector<4x32xf32> to vector<4x1xf32>
    %48 = vector.extract_strided_slice %27 {offsets = [0, 0], sizes = [4, 31], strides = [1, 1]} : vector<4x32xf32> to vector<4x31xf32>
    %49 = tpu.concatenate %47, %48 in 1 : vector<4x1xf32>, vector<4x31xf32> -> vector<4x32xf32>
    %cst_16 = arith.constant 0.000000e+00 : f32
    %50 = vector.broadcast %cst_16 : f32 to vector<4x32xf32>
    %51 = arith.select %46, %50, %49 : vector<4x32xi1>, vector<4x32xf32>
    %c15_i32 = arith.constant 15 : i32
    %52 = vector.broadcast %c15_i32 : i32 to vector<4x32xi32>
    %53 = arith.cmpi eq, %44, %52 : vector<4x32xi32>
    %54 = vector.extract_strided_slice %27 {offsets = [0, 1], sizes = [4, 31], strides = [1, 1]} : vector<4x32xf32> to vector<4x31xf32>
    %55 = vector.extract_strided_slice %27 {offsets = [0, 0], sizes = [4, 1], strides = [1, 1]} : vector<4x32xf32> to vector<4x1xf32>
    %56 = tpu.concatenate %54, %55 in 1 : vector<4x31xf32>, vector<4x1xf32> -> vector<4x32xf32>
    %cst_17 = arith.constant 0.000000e+00 : f32
    %57 = vector.broadcast %cst_17 : f32 to vector<4x32xf32>
    %58 = arith.select %53, %57, %56 : vector<4x32xi1>, vector<4x32xf32>
    %59 = tpu.concatenate %51, %27, %58 in 0 : vector<4x32xf32>, vector<4x32xf32>, vector<4x32xf32> -> vector<12x32xf32>
    %c0_18 = arith.constant 0 : index
    %c0_19 = arith.constant 0 : index
    %60 = vector.load %arg2[%c0_18, %c0_19] : memref<4x12xf32, #tpu.memory_space<vmem>>, vector<4x12xf32>
    %cst_20 = arith.constant dense<0.000000e+00> : vector<4x32xf32>
    %61 = tpu.matmul %60, %59, %cst_20 {dimension_numbers = #tpu.dot_dimension_numbers<[1], [0], [0], [1], [0, 0, 1, 1], [], []>} : vector<4x12xf32>, vector<12x32xf32>, vector<4x32xf32> -> vector<4x32xf32>
    %c0_21 = arith.constant 0 : index
    %c2 = arith.constant 2 : index
    %62 = vector.load %arg4[%c0_21, %c2] : memref<4x4xf32, #tpu.memory_space<vmem>>, vector<4x1xf32>
    %c0_22 = arith.constant 0 : index
    %c3 = arith.constant 3 : index
    %63 = vector.load %arg4[%c0_22, %c3] : memref<4x4xf32, #tpu.memory_space<vmem>>, vector<4x1xf32>
    %cst_23 = arith.constant dense<0.000000e+00> : vector<4xf32>
    %64 = vector.multi_reduction <add>, %61, %cst_23 [1] : vector<4x32xf32> to vector<4xf32>
    %65 = vector.shape_cast %64 : vector<4xf32> to vector<4x1xf32>
    %cst_24 = arith.constant 3.200000e+01 : f32
    %66 = vector.broadcast %cst_24 : f32 to vector<4x1xf32>
    %67 = arith.divf %65, %66 : vector<4x1xf32>
    %68 = arith.mulf %61, %61 : vector<4x32xf32>
    %cst_25 = arith.constant dense<0.000000e+00> : vector<4xf32>
    %69 = vector.multi_reduction <add>, %68, %cst_25 [1] : vector<4x32xf32> to vector<4xf32>
    %70 = vector.shape_cast %69 : vector<4xf32> to vector<4x1xf32>
    %cst_26 = arith.constant 3.200000e+01 : f32
    %71 = vector.broadcast %cst_26 : f32 to vector<4x1xf32>
    %72 = arith.divf %70, %71 : vector<4x1xf32>
    %73 = arith.mulf %67, %67 : vector<4x1xf32>
    %74 = arith.subf %72, %73 : vector<4x1xf32>
    %cst_27 = arith.constant 9.99999974E-6 : f32
    %75 = vector.broadcast %cst_27 : f32 to vector<4x1xf32>
    %76 = arith.addf %74, %75 : vector<4x1xf32>
    %77 = math.rsqrt %76 : vector<4x1xf32>
    %78 = arith.mulf %62, %77 : vector<4x1xf32>
    %79 = vector.broadcast %78 : vector<4x1xf32> to vector<4x32xf32>
    %80 = arith.mulf %61, %79 : vector<4x32xf32>
    %81 = arith.mulf %67, %78 : vector<4x1xf32>
    %82 = arith.subf %63, %81 : vector<4x1xf32>
    %83 = vector.broadcast %82 : vector<4x1xf32> to vector<4x32xf32>
    %84 = arith.addf %80, %83 : vector<4x32xf32>
    %cst_28 = arith.constant 0.000000e+00 : f32
    %85 = vector.broadcast %cst_28 : f32 to vector<4x32xf32>
    %86 = arith.maximumf %84, %85 : vector<4x32xf32>
    %c0_29 = arith.constant 0 : index
    %c0_30 = arith.constant 0 : index
    %87 = vector.load %arg3[%c0_29, %c0_30] : memref<16x4xf32, #tpu.memory_space<vmem>>, vector<16x4xf32>
    %cst_31 = arith.constant dense<0.000000e+00> : vector<16x32xf32>
    %88 = tpu.matmul %87, %86, %cst_31 {dimension_numbers = #tpu.dot_dimension_numbers<[1], [0], [0], [1], [0, 0, 1, 1], [], []>} : vector<16x4xf32>, vector<4x32xf32>, vector<16x32xf32> -> vector<16x32xf32>
    %c0_32 = arith.constant 0 : index
    %c0_33 = arith.constant 0 : index
    %89 = vector.load %arg5[%c0_32, %c0_33] : memref<16x2xf32, #tpu.memory_space<vmem>>, vector<16x1xf32>
    %c0_34 = arith.constant 0 : index
    %c1_35 = arith.constant 1 : index
    %90 = vector.load %arg5[%c0_34, %c1_35] : memref<16x2xf32, #tpu.memory_space<vmem>>, vector<16x1xf32>
    %cst_36 = arith.constant dense<0.000000e+00> : vector<16xf32>
    %91 = vector.multi_reduction <add>, %88, %cst_36 [1] : vector<16x32xf32> to vector<16xf32>
    %92 = vector.shape_cast %91 : vector<16xf32> to vector<16x1xf32>
    %cst_37 = arith.constant 3.200000e+01 : f32
    %93 = vector.broadcast %cst_37 : f32 to vector<16x1xf32>
    %94 = arith.divf %92, %93 : vector<16x1xf32>
    %95 = arith.mulf %88, %88 : vector<16x32xf32>
    %cst_38 = arith.constant dense<0.000000e+00> : vector<16xf32>
    %96 = vector.multi_reduction <add>, %95, %cst_38 [1] : vector<16x32xf32> to vector<16xf32>
    %97 = vector.shape_cast %96 : vector<16xf32> to vector<16x1xf32>
    %cst_39 = arith.constant 3.200000e+01 : f32
    %98 = vector.broadcast %cst_39 : f32 to vector<16x1xf32>
    %99 = arith.divf %97, %98 : vector<16x1xf32>
    %100 = arith.mulf %94, %94 : vector<16x1xf32>
    %101 = arith.subf %99, %100 : vector<16x1xf32>
    %cst_40 = arith.constant 9.99999974E-6 : f32
    %102 = vector.broadcast %cst_40 : f32 to vector<16x1xf32>
    %103 = arith.addf %101, %102 : vector<16x1xf32>
    %104 = math.rsqrt %103 : vector<16x1xf32>
    %105 = arith.mulf %89, %104 : vector<16x1xf32>
    %106 = vector.broadcast %105 : vector<16x1xf32> to vector<16x32xf32>
    %107 = arith.mulf %88, %106 : vector<16x32xf32>
    %108 = arith.mulf %94, %105 : vector<16x1xf32>
    %109 = arith.subf %90, %108 : vector<16x1xf32>
    %110 = vector.broadcast %109 : vector<16x1xf32> to vector<16x32xf32>
    %111 = arith.addf %107, %110 : vector<16x32xf32>
    %112 = arith.addf %111, %0 : vector<16x32xf32>
    %cst_41 = arith.constant 0.000000e+00 : f32
    %113 = vector.broadcast %cst_41 : f32 to vector<16x32xf32>
    %114 = arith.maximumf %112, %113 : vector<16x32xf32>
    %c0_42 = arith.constant 0 : index
    %c0_43 = arith.constant 0 : index
    %115 = vector.load %arg6[%c0_42, %c0_43] : memref<16x32xf32, #tpu.memory_space<vmem>>, vector<16x32xf32>
    tpu.vector_store %arg6[%c0_42, %c0_43], %114 {strides = array<i32>} : memref<16x32xf32, #tpu.memory_space<vmem>>, vector<16x32xf32>,
    return
  }
}

</mosaic_0001>

<bundles_post_ra>
// kernel: tpu_custom_call.1
= control target key start
LH: loop header
LB: loop body
LE: loop exit
PB: predicated region body
PF: predicated region fallthrough
CT: control target
= control target key end

     0   :  { %v558_v2 = vmov 0.0|0.0   ;;  %vm559_vm0 = vmmov 0   ;;  %v560_v4 = vmov 0.0   ;;  %s685_s0 = inlined_call_operand.vmem [shape: f32[16,32], index: 0, kind: input, shape index: {}]   ;;  %s686_s1 = inlined_call_operand.vmem [shape: f32[4,16], index: 1, kind: input, shape index: {}]   ;;  %s687_s2 = inlined_call_operand.vmem [shape: f32[4,12], index: 2, kind: input, shape index: {}]   ;;  %s688_s3 = inlined_call_operand.vmem [shape: f32[16,4], index: 3, kind: input, shape index: {}]   ;;  %s689_s4 = inlined_call_operand.vmem [shape: f32[4,4], index: 4, kind: input, shape index: {}]   ;;  %s690_s5 = inlined_call_operand.vmem [shape: f32[16,2], index: 5, kind: input, shape index: {}]   ;;  %s691_s6 = inlined_call_operand.hbm [shape: f32[16,32], index: 6, kind: output, shape index: {}]  }
   0x1   :  { %v611_v0 = vld [vmem:[%s685_s0] sm:$0xff]  ;;  %v616_v1 = vld [vmem:[%s685_s0 + $0x8] sm:$0xff]  ;;  %497 = vmatprep.subr.bf16.mxu0 %v558_v2  ;;  %482 = vmatprep.mubr.msk.f32.mxu0 %vm559_vm0, %v560_v4 }
   0x2   :  { %v498_v3 = vpack.c.bf16 %v616_v1, %v611_v0 }
   0x3   :  { %11 = vsyncpa [#allocation3], 0  ;;  %500 = vmatprep.subr.bf16.mxu1 %v558_v2  ;;  %489 = vmatprep.mubr.msk.f32.mxu1 %vm559_vm0, %v560_v4  ;;  %v26_v5 = vld [vmem:[%s686_s1] sm:$0xf]  ;;  %vm27_vm1 = vcmask 130048   ;;  %vm102_vm2 = vcmask 257024   ;;  %v137_v31 = vlaneseq }
   0x4   :  { %499 = vmatpush3.bf16.msra.mxu0 %v498_v3  ;;  %v561_v11 = vmov 0   ;;  %v562_v19 = vmov 1   ;;  %v630_v20 = vld [vmem:[%s689_s4] sm:$0xf]  ;;  %s563_s27 = smov 1   ;;  %s564_s4 = smov 97  }
   0x5   :  { %519 = vset.pattern.permute.xlu1 %v561_v11  ;;  %520 = vset.pattern.permute.xlu0 %v562_v19  ;;  %s565_s28 = smov 127   ;;  %s566_s29 = smov 31   ;;  %v138_v33 = vand.u32 127, %v137_v31  ;;  %vm159_vm3 = vcmask 7168   ;;  %vm169_vm5 = vcmask 252928   ;;  %vm174_vm7 = vcmask 1043456  }
   0x6   :  { %vm567_vm8 = vmmov 1   ;;  %v176_v45 = vld [vmem:[%s687_s2] sm:$0xf]  ;;  %vm177_vm10 = vcmask 97280   ;;  %v568_v51 = vmov 2   ;;  %v569_v62 = vmov 3  }
   0x7   :  { %483 = vmatmul.mubr.msk.f32.vlgmr.msra.gmra.mrb[0].mxu0 %vm27_vm1, %v26_v5  ;;  %v143_v34 = vand.u32 15, %v138_v33  ;;  %vm502_vm9 = vmpackc.low %vm174_vm7, %vm567_vm8  ;;  %v287_v3 = vld [vmem:[%s688_s3] sm:$0xff]  ;;  %vm289_vm11 = vcmask 31744   ;;  %vm376_vm12 = vcmask 261120  }
   0x8   :  { %494 = vmatprep.mubr.msk.f32.mxu0 %vm289_vm11, %v287_v3  ;;  %v374_v33 = vld [vmem:[%s690_s5] sm:$0xff] }
   0x9   :  { %vm151_vm4 = vcmp.eq.s32.totalorder %v143_v34, 0  ;;  %vm162_vm6 = vcmp.eq.s32.totalorder %v143_v34, 15 }
  0xda   :  { %v97_v6 = vpop.f32.mrb[0].mxu0 }
  0xdb   :  { %v484_v7 = vpop.f32.mrb[1].mxu0  ;;  %v103_v8 = vsel %vm102_vm2, %v97_v6, 0.0  ;;  %v108_v9 = vmul.f32 %v97_v6, %v97_v6 }
  0xdc   :  { %104 = vadd.xlane.f32.xlu0 %v103_v8 }
  0xdd   :  { %v109_v10 = vsel %vm102_vm2, %v108_v9, 0.0  ;;  %v288_v9 = vld [vmem:[%s688_s3 + $0x8] sm:$0xff] }
  0xe0   :  { %110 = vadd.xlane.f32.xlu0 %v109_v10 }
 0x169   :  { %v105_v12 = vpop.xlane.xlu0 %104 }
 0x16a   :  { %v107_v13 = vmul.f32 0.03125, %v105_v12 }
 0x16c   :  { %v113_v15 = vmul.f32 %v107_v13, %v107_v13 }
 0x16d   :  { %v111_v14 = vpop.xlane.xlu0 %110 }
 0x16e   :  { %v112_v16 = vmul.f32 0.03125, %v111_v14 }
 0x170   :  { %v114_v17 = vsub.f32 %v112_v16, %v113_v15 }
 0x172   :  { %v115_v18 = vadd.f32 1e-05, %v114_v17 }
 0x174   :  { %526 = vrsqrt.f32 %v115_v18 }
 0x17e   :  { %v527_v21 = vpop.eup %526 }
 0x17f   :  { %v117_v22 = vmul.f32 %v527_v21, %v630_v20 }
 0x181   :  { %v124_v23 = vmul.f32 %v117_v22, %v107_v13 }
 0x183   :  { %126 = vrot.lane.b32.xlu1 %v124_v23, %s563_s27 }
 0x187   :  { %120 = vperm.xlu1 %519, %v117_v22  }
 0x18b   :  { %521 = vset.pattern.permute.xlu1 %v568_v51 }
 0x1f5   :  { %v127_v24 = vpop.permute.xlu1 %126 }
 0x1f6   :  { %v129_v25 = vsub.f32 %v630_v20, %v127_v24 }
 0x1f8   :  { %132 = vperm.xlu0 %520, %v129_v25  }
 0x1fc   :  { %523 = vset.pattern.permute.xlu0 %v561_v11 }
 0x206   :  { %v121_v26 = vpop.permute.xlu1 %120 }
 0x207   :  { %v123_v27 = vmul.f32 %v121_v26, %v97_v6 }
 0x277   :  { %v133_v28 = vpop.permute.xlu0 %132 }
 0x278   :  { %v135_v29 = vadd.f32 %v133_v28, %v123_v27 }
 0x27a   :  { %v136_v30 = vmax.f32 %v135_v29, 0.0 }
 0x27c   :  { %153 = vrot.lane.b32.xlu1 %v136_v30, %s564_s4  ;;  %v172_v40 = vrot.slane %v136_v30, 4 }
 0x280   :  { %156 = vrot.lane.b32.xlu1 %v136_v30, %s563_s27 }
 0x284   :  { %163 = vrot.lane.b32.xlu1 %v136_v30, %s565_s28 }
 0x288   :  { %166 = vrot.lane.b32.xlu1 %v136_v30, %s566_s29 }
 0x2ee   :  { %v154_v32 = vpop.permute.xlu1 %153 }
 0x2f2   :  { %v157_v35 = vpop.permute.xlu1 %156 }
 0x2f3   :  { %v160_v36 = vsel %vm159_vm3, %v154_v32, %v157_v35 }
 0x2f4   :  { %v161_v38 = vsel %vm151_vm4, 0.0, %v160_v36  ;;  %v375_v36 = vld [vmem:[%s690_s5 + $0x8] sm:$0xff]  ;;  %s570_s5 = smov [#allocation2]  }
 0x2f5   :  { %v175_v43 = vsel %vm174_vm7, %v161_v38, %v172_v40  ;;  %s452_s14 = sshll.u32 %s570_s5, 4  ;;  %s453_s14 = int_to_ptr.vmem [resolvable:$true] %s452_s14 }
 0x2f6   :  { %v164_v37 = vpop.permute.xlu1 %163  ;;  %s534_s15 = scalar_lea.vmem %s453_s14, 256  ;;  %p539_p1 = scmp.lt.s32.totalorder %s453_s14, %s453_s14 }
 0x2f7   :  { %p535_p0 = scmp.ne.s32.totalorder %s453_s14, %s534_s15  ;;  %p540_p2 = scmp.lt.s32.totalorder %s534_s15, %s534_s15 }
 0x2f9   :  { %p541_p3 = por %p540_p2, %p539_p1 }
 0x2fa   :  { %v167_v39 = vpop.permute.xlu1 %166 }
 0x2fb   :  { %v170_v41 = vsel %vm169_vm5, %v164_v37, %v167_v39  ;;  %p542_p4 = pnand %p541_p3, %p535_p0 }
 0x2fc   :  { %v171_v42 = vsel %vm162_vm6, 0.0, %v170_v41 }
 0x2fd   :  { %v501_v44 = vpack.c.bf16 %v171_v42, %v175_v43 }
 0x2ff   :  { %503 = vmatpush3.bf16.msk.msra.mxu1 %vm502_vm9, %v501_v44 }
 0x302   :  { %490 = vmatmul.mubr.msk.f32.vlgmr.msra.gmra.mrb[0].mxu1 %vm177_vm10, %v176_v45 }
 0x3d5   :  { %v250_v46 = vpop.f32.mrb[0].mxu1 }
 0x3d6   :  { %v491_v47 = vpop.f32.mrb[1].mxu1  ;;  %v254_v48 = vsel %vm102_vm2, %v250_v46, 0.0  ;;  %v258_v49 = vmul.f32 %v250_v46, %v250_v46 }
 0x3d7   :  { %255 = vadd.xlane.f32.xlu1 %v254_v48 }
 0x3d8   :  { %v259_v50 = vsel %vm102_vm2, %v258_v49, 0.0 }
 0x3d9   :  { %260 = vadd.xlane.f32.xlu0 %v259_v50 }
 0x464   :  { %v256_v52 = vpop.xlane.xlu1 %255 }
 0x465   :  { %v257_v53 = vmul.f32 0.03125, %v256_v52 }
 0x466   :  { %v261_v54 = vpop.xlane.xlu0 %260 }
 0x467   :  { %v263_v55 = vmul.f32 %v257_v53, %v257_v53  ;;  %v262_v56 = vmul.f32 0.03125, %v261_v54 }
 0x469   :  { %v264_v57 = vsub.f32 %v262_v56, %v263_v55 }
 0x46b   :  { %v265_v58 = vadd.f32 1e-05, %v264_v57 }
 0x46d   :  { %528 = vrsqrt.f32 %v265_v58 }
 0x477   :  { %v529_v59 = vpop.eup %528 }
 0x478   :  { %v267_v60 = vmul.f32 %v529_v59, %v630_v20 }
 0x47a   :  { %v274_v61 = vmul.f32 %v267_v60, %v257_v53 }
 0x47c   :  { %276 = vrot.lane.b32.xlu1 %v274_v61, %s563_s27 }
 0x480   :  { %270 = vperm.xlu1 %521, %v267_v60  }
 0x484   :  { %522 = vset.pattern.permute.xlu1 %v569_v62 }
 0x4ee   :  { %v277_v63 = vpop.permute.xlu1 %276 }
 0x4ef   :  { %v279_v2 = vsub.f32 %v630_v20, %v277_v63 }
 0x4f1   :  { %282 = vperm.xlu1 %522, %v279_v2  }
 0x4f5   :  { %524 = vset.pattern.permute.xlu1 %v561_v11 }
 0x4ff   :  { %v271_v4 = vpop.permute.xlu1 %270 }
 0x500   :  { %v273_v5 = vmul.f32 %v271_v4, %v250_v46 }
 0x570   :  { %v283_v6 = vpop.permute.xlu1 %282 }
 0x571   :  { %v285_v7 = vadd.f32 %v283_v6, %v273_v5 }
 0x573   :  { %v286_v8 = vmax.f32 %v285_v7, 0.0 }
 0x575   :  { %492 = vmatprep.subr.msk.mxu0 %vm174_vm7, %v286_v8 }
 0x576   :  { %493 = vmatpush3.msk.msra.mxu0 %vm174_vm7, %v286_v8 }
 0x577   :  { %495 = vmatmul.mubr.msk.f32.vlgmr.msra.gmra.mrb[2].mxu0 %vm289_vm11, %v288_v9 }
 0x64a   :  { %v496_v10 = vpop.f32.mrb[2].mxu0 }
 0x64b   :  { %v365_v12 = vpop.f32.mrb[3].mxu0  ;;  %v380_v11 = vsel %vm376_vm12, %v496_v10, 0.0  ;;  %v386_v16 = vmul.f32 %v496_v10, %v496_v10 }
 0x64c   :  { %v385_v13 = vmul.f32 %v365_v12, %v365_v12  ;;  %v377_v14 = vsel %vm376_vm12, %v365_v12, 0.0  ;;  %381 = vadd.xlane.f32.xlu1 %v380_v11 }
 0x64d   :  { %378 = vadd.xlane.f32.xlu0 %v377_v14  ;;  %v390_v17 = vsel %vm376_vm12, %v386_v16, 0.0 }
 0x64e   :  { %v387_v15 = vsel %vm376_vm12, %v385_v13, 0.0 }
 0x651   :  { %388 = vadd.xlane.f32.xlu0 %v387_v15 }
 0x655   :  { %391 = vadd.xlane.f32.xlu0 %v390_v17 }
 0x6d9   :  { %v382_v21 = vpop.xlane.xlu1 %381 }
 0x6da   :  { %v379_v18 = vpop.xlane.xlu0 %378  ;;  %v384_v24 = vmul.f32 0.03125, %v382_v21 }
 0x6db   :  { %v383_v20 = vmul.f32 0.03125, %v379_v18 }
 0x6dc   :  { %v396_v28 = vmul.f32 %v384_v24, %v384_v24 }
 0x6dd   :  { %v395_v23 = vmul.f32 %v383_v20, %v383_v20 }
 0x6de   :  { %v389_v22 = vpop.xlane.xlu0 %388 }
 0x6df   :  { %v393_v25 = vmul.f32 0.03125, %v389_v22 }
 0x6e1   :  { %v397_v26 = vsub.f32 %v393_v25, %v395_v23 }
 0x6e2   :  { %v392_v27 = vpop.xlane.xlu0 %391 }
 0x6e3   :  { %v399_v29 = vadd.f32 1e-05, %v397_v26  ;;  %v394_v30 = vmul.f32 0.03125, %v392_v27 }
 0x6e5   :  { %530 = vrsqrt.f32 %v399_v29  ;;  %v398_v31 = vsub.f32 %v394_v30, %v396_v28 }
 0x6e7   :  { %v400_v32 = vadd.f32 1e-05, %v398_v31 }
 0x6e9   :  { %532 = vrsqrt.f32 %v400_v32 }
 0x6ef   :  { %v531_v34 = vpop.eup %530 }
 0x6f0   :  { %v403_v35 = vmul.f32 %v531_v34, %v374_v33 }
 0x6f2   :  { %v417_v37 = vmul.f32 %v403_v35, %v383_v20 }
 0x6f3   :  { %v533_v38 = vpop.eup %532 }
 0x6f4   :  { %421 = vrot.lane.b32.xlu0 %v417_v37, %s563_s27  ;;  %v404_v39 = vmul.f32 %v533_v38, %v375_v36 }
 0x6f6   :  { %412 = vperm.xlu1 %524, %v404_v39   ;;  %v418_v40 = vmul.f32 %v404_v39, %v384_v24 }
 0x6f8   :  { %423 = vrot.lane.b32.xlu0 %v418_v40, %s563_s27 }
 0x6fc   :  { %407 = vperm.xlu0 %523, %v403_v35  }
 0x700   :  { %525 = vset.pattern.permute.xlu0 %v562_v19 }
 0x766   :  { %v422_v41 = vpop.permute.xlu0 %421 }
 0x767   :  { %v427_v42 = vsub.f32 %v374_v33, %v422_v41 }
 0x769   :  { %431 = vperm.xlu0 %525, %v427_v42  }
 0x76a   :  { %v424_v43 = vpop.permute.xlu0 %423 }
 0x76b   :  { %v428_v44 = vsub.f32 %v375_v36, %v424_v43 }
 0x76d   :  { %436 = vperm.xlu0 %525, %v428_v44  }
 0x775   :  { %v413_v47 = vpop.permute.xlu1 %412 }
 0x776   :  { %v416_v50 = vmul.f32 %v496_v10, %v413_v47 }
 0x77b   :  { %v408_v45 = vpop.permute.xlu0 %407 }
 0x77c   :  { %v415_v46 = vmul.f32 %v408_v45, %v365_v12 }
 0x7e8   :  { %v432_v48 = vpop.permute.xlu0 %431 }
 0x7e9   :  { %v439_v49 = vadd.f32 %v432_v48, %v415_v46 }
 0x7eb   :  { %v441_v51 = vadd.f32 %v439_v49, %v611_v0 }
 0x7ec   :  { %v437_v52 = vpop.permute.xlu0 %436 }
 0x7ed   :  { %v443_v53 = vmax.f32 %v441_v51, 0.0  ;;  %v440_v54 = vadd.f32 %v437_v52, %v416_v50 }
 0x7ef   :  { %445 = vst.msk [vmem:[#allocation2] sm:$0xff] %vm376_vm12, %v443_v53  ;;  %v442_v19 = vadd.f32 %v440_v54, %v616_v1 }
 0x7f1   :  { %v444_v55 = vmax.f32 %v442_v19, 0.0 }
 0x7f3   :  { %446 = vst.msk [vmem:[#allocation2 + $0x8] sm:$0xff] %vm376_vm12, %v444_v55 }
 0x7f4   :  { %545 = shalt.err (!%p542_p4)
}
 0x7f5   :  { %s546_s18 = scalar_lea.hbm %s691_s6, 256 }
 0x7f6   :  { %p547_p5 = scmp.ne.s32.totalorder %s691_s6, %s546_s18  ;;  %p550_p6 = scmp.lt.u32.totalorder %s546_s18, %s691_s6 }
 0x7f8   :  { %p552_p7 = pnand %p550_p6, %p547_p5 }
 0x7fa   :  { %555 = shalt.err (!%p552_p7)
}
 0x7fb   :  { %s571_s23 = smov 128   ;;  %s572_s24 = smov 8  }
 0x7fc   :  { %458 = dma.vmem_to_hbm [thread:$0]  %s453_s14, 256, %s691_s6, [#allocation3], %s571_s23, %s571_s23, %s572_s24  }
 0x7fd   :  { %556 = dma.done.wait [#allocation3], 256  }
 0x7fe   :  { %557 = vsyncadd [#allocation3], 4294967040 }
 0x7ff   :  { %462 = vsyncpa [#allocation3], 1 }

</bundles_post_ra>
